<compile_context>
chip_gen: v7x
topology: tpu7x:2x2x1
jax: 0.10.0
libtpu: 0.0.40
codegen_flags: <defaults>
</compile_context>

<pallas_src>
import functools
import math

import jax
import jax.numpy as jnp
from jax.experimental import pallas as pl
from jax.experimental.pallas import tpu as pltpu

LN_EPS = 1e-6  # LayerNormalization: (z - mu) / (std + eps) * gamma + beta (unbiased std)


def _co_selection_kernel(s1, d,
                         f_ref,    # (S1+S2, D)      both streams, stream-1 rows first
                         wv_ref,   # (D, 2*H*D)      [Wv1 | Wv2]
                         wf_ref,   # (S1+S2, 2*H*D)  fuse_v weight with block mask folded in
                         wp_ref,   # (2*H*D, 2*D)    [[Wp1|Wp2],[Wp1|Wp2]]
                         bp_ref,   # (1, 2*D)        pre-folded fuse/proj biases
                         gb_ref,   # (2, D)          [gamma; beta]
                         out_ref): # (S1+S2, D)
    f = f_ref[...]

    # Value projections for both streams in a single MXU call; the cross-stream
    # lane blocks are masked away by wf_masked below, so they never propagate.
    v_all = jnp.dot(f, wv_ref[...], preferred_element_type=jnp.float32)   # (S, 2HD)

    # fuse_v over the concatenated sequence axis: VPU multiply + sublane reduce.
    # Lanes [0, HD) hold the stream-1 partial fuse, lanes [HD, 2HD) the stream-2
    # partial fuse (projection/fuse biases are folded into b_p on the host).
    v_fuse = jnp.sum(wf_ref[...] * v_all, axis=0, keepdims=True)          # (1, 2HD)

    # Softmax over the size-1 fused-key axis == 1, so the per-head context is the
    # fused value itself; proj_1 / proj_2 therefore act on ONE row.  w_p stacks
    # [Wp1|Wp2] twice so the two lane halves of v_fuse are summed by the matmul:
    #   o_both = [ctx @ Wp1 + bp1 | ctx @ Wp2 + bp2]
    o_both = (jnp.dot(v_fuse, wp_ref[...], preferred_element_type=jnp.float32)
              + bp_ref[...])                                              # (1, 2D)
    o1 = jnp.broadcast_to(o_both[:, :d], f.shape)
    o2 = jnp.broadcast_to(o_both[:, d:], f.shape)

    # Residual: stream-1 rows get o1, stream-2 rows get o2 (dropout = eval identity).
    row = jax.lax.broadcasted_iota(jnp.int32, f.shape, 0)
    z = f + jnp.where(row < s1, o1, o2)

    # LayerNormalization: unbiased std (divide by d-1), eps added to std.
    mu = jnp.mean(z, axis=-1, keepdims=True)
    var = jnp.sum((z - mu) ** 2, axis=-1, keepdims=True) / (d - 1)
    inv = pl.reciprocal(jnp.sqrt(var) + LN_EPS, approx=True)
    gamma = gb_ref[0:1, :]
    beta = gb_ref[1:2, :]
    out_ref[...] = ((z - mu) * inv * gamma + beta).astype(out_ref.dtype)


def _pack_weights(weights, s1, s2):
    (wq1, bq1, wk1, bk1, wv1, bv1,
     wq2, bq2, wk2, bk2, wv2, bv2,
     wfk, bfk, wfv, bfv,
     wp1, bp1, wp2, bp2, gamma, beta) = weights
    # q/k projections and fuse_k only feed attention scores; softmax over the
    # size-1 fused-key axis is identically 1, so they are dead code.
    del wq1, bq1, wk1, bk1, wq2, bq2, wk2, bk2, wfk, bfk

    hd = wv1.shape[1]            # n_heads * dim
    s = s1 + s2

    w_v = jnp.concatenate([wv1, wv2], axis=1)                        # (D, 2HD)

    # fuse_v weight as a column, with the stream<->lane block mask folded in.
    wf_col = wfv.reshape(s, 1)
    same_block = (jnp.arange(s)[:, None] < s1) == (jnp.arange(2 * hd)[None, :] < hd)
    wf_masked = wf_col * same_block.astype(wfv.dtype)                # (S, 2HD)

    # Constant part of the fused value (from the v-projection biases + fuse bias).
    const = (jnp.sum(wfv[:, :s1]) * bv1
             + jnp.sum(wfv[:, s1:]) * bv2
             + bfv[0, 0])                                            # (1, HD)

    wp12 = jnp.concatenate([wp1, wp2], axis=1)                       # (HD, 2D)
    w_p = jnp.concatenate([wp12, wp12], axis=0)                      # (2HD, 2D)
    b_p = jnp.concatenate([jnp.dot(const, wp1) + bp1,
                           jnp.dot(const, wp2) + bp2], axis=1)       # (1, 2D)

    gb = jnp.concatenate([gamma, beta], axis=0)                      # (2, D)
    return w_v, wf_masked, w_p, b_p, gb


def co_selection(feature1, feature2, weights, n_heads):
    del n_heads  # head count is folded into the packed weight shapes
    B, S1, D = feature1.shape
    _, S2, _ = feature2.shape
    S = S1 + S2

    f_cat = jnp.concatenate([feature1, feature2], axis=1)           # (B, S, D)
    w_v, wf_masked, w_p, b_p, gb = _pack_weights(weights, S1, S2)

    kernel = functools.partial(_co_selection_kernel, S1, D)

    feat_spec = pl.BlockSpec((None, S, D), lambda b: (b, 0, 0))
    weight_specs = [pl.BlockSpec(a.shape, lambda b: (0, 0))
                    for a in (w_v, wf_masked, w_p, b_p, gb)]

    out_cat = pl.pallas_call(
        kernel,
        out_shape=jax.ShapeDtypeStruct((B, S, D), feature1.dtype),
        grid_spec=pltpu.PrefetchScalarGridSpec(
            num_scalar_prefetch=0,
            grid=(B,),
            in_specs=[feat_spec] + weight_specs,
            out_specs=feat_spec),
        compiler_params=pltpu.CompilerParams(
            dimension_semantics=("parallel",)),
    )(f_cat, w_v, wf_masked, w_p, b_p, gb)

    return out_cat[:, :S1, :], out_cat[:, S1:, :]


def reference(f1, f2, w, n_heads):
    """Pure-JAX reference following the torch forward structure exactly (full q/k path)."""
    (wq1, bq1, wk1, bk1, wv1, bv1,
     wq2, bq2, wk2, bk2, wv2, bv2,
     wfk, bfk, wfv, bfv,
     wp1, bp1, wp2, bp2, gamma, beta) = w
    B, S1, D = f1.shape
    _, S2, _ = f2.shape
    H = n_heads
    hp = jax.lax.Precision.HIGHEST

    def heads(x, wt, b):
        y = jnp.dot(x, wt, precision=hp) + b                    # (B,S,H*D)
        return y.reshape(B, -1, H, D).transpose(0, 2, 1, 3)     # (B,H,S,D)

    q1, k1, v1 = heads(f1, wq1, bq1), heads(f1, wk1, bk1), heads(f1, wv1, bv1)
    q2, k2, v2 = heads(f2, wq2, bq2), heads(f2, wk2, bk2), heads(f2, wv2, bv2)

    k_cat = jnp.concatenate([k1, k2], axis=2)                   # (B,H,S1+S2,D)
    v_cat = jnp.concatenate([v1, v2], axis=2)
    k_fuse = (jnp.einsum('bhsd,s->bhd', k_cat, wfk[0], precision=hp) + bfk[0, 0])[:, :, None, :]
    v_fuse = (jnp.einsum('bhsd,s->bhd', v_cat, wfv[0], precision=hp) + bfv[0, 0])[:, :, None, :]

    def attend(q):
        scores = jnp.einsum('bhqd,bhkd->bhqk', q, k_fuse, precision=hp) / math.sqrt(D)
        m = jnp.max(scores, axis=-1, keepdims=True)
        e = jnp.exp(scores - m)
        attn = e / jnp.sum(e, axis=-1, keepdims=True)
        ctx = jnp.einsum('bhqk,bhkd->bhqd', attn, v_fuse, precision=hp)
        return ctx.transpose(0, 2, 1, 3).reshape(B, -1, H * D)

    o1 = jnp.dot(attend(q1), wp1, precision=hp) + bp1
    o2 = jnp.dot(attend(q2), wp2, precision=hp) + bp2

    def ln(z):
        mu = jnp.mean(z, axis=-1, keepdims=True)
        var = jnp.sum((z - mu) ** 2, axis=-1, keepdims=True) / (D - 1)
        return (z - mu) / (jnp.sqrt(var) + LN_EPS) * gamma[0] + beta[0]

    return ln(f1 + o1), ln(f2 + o2)


if __name__ == "__main__":
    B, D, H, S1, S2 = 2, 32, 2, 8, 8   # dim=32, n_heads=2, seq1=seq2=8
    key = jax.random.PRNGKey(0)
    kf1, kf2, kw = jax.random.split(key, 3)
    feature1 = jax.random.normal(kf1, (B, S1, D), jnp.float32)
    feature2 = jax.random.normal(kf2, (B, S2, D), jnp.float32)

    wkeys = iter(jax.random.split(kw, 32))

    def lin_params(fan_in, fan_out):
        bound = math.sqrt(6.0 / (fan_in + fan_out))
        w = jax.random.uniform(next(wkeys), (fan_in, fan_out), jnp.float32, -bound, bound)
        b = jax.random.uniform(next(wkeys), (1, fan_out), jnp.float32, -0.05, 0.05)
        return w, b

    wq1, bq1 = lin_params(D, H * D)
    wk1, bk1 = lin_params(D, H * D)
    wv1, bv1 = lin_params(D, H * D)
    wq2, bq2 = lin_params(D, H * D)
    wk2, bk2 = lin_params(D, H * D)
    wv2, bv2 = lin_params(D, H * D)
    wfk_t, bfk = lin_params(S1 + S2, 1)   # torch fuse_k weight is (1, S1+S2)
    wfv_t, bfv = lin_params(S1 + S2, 1)
    wfk, wfv = wfk_t.T, wfv_t.T           # (1, S1+S2)
    wp1, bp1 = lin_params(H * D, D)
    wp2, bp2 = lin_params(H * D, D)
    gamma = jnp.ones((1, D), jnp.float32)
    beta = jnp.zeros((1, D), jnp.float32)

    weights = [wq1, bq1, wk1, bk1, wv1, bv1,
               wq2, bq2, wk2, bk2, wv2, bv2,
               wfk, bfk, wfv, bfv,
               wp1, bp1, wp2, bp2, gamma, beta]

    co_selection_jit = jax.jit(co_selection, static_argnums=3)
    out1, out2 = co_selection_jit(feature1, feature2, weights, H)
    jax.block_until_ready((out1, out2))

    r1, r2 = reference(feature1, feature2, weights, H)
    err = max(float(jnp.max(jnp.abs(out1 - r1))), float(jnp.max(jnp.abs(out2 - r2))))
    assert err < 5e-2, f"mismatch vs reference: {err}"
    print("KERNEL_OK")
</pallas_src>

<mosaic_0001>
module attributes {stable_mosaic.version = 11 : i64} {
  func.func @_co_selection_kernel(%arg0: i32, %arg1: memref<1x16x32xf32, #tpu.memory_space<vmem>>, %arg2: memref<32x128xf32, #tpu.memory_space<vmem>>, %arg3: memref<16x128xf32, #tpu.memory_space<vmem>>, %arg4: memref<128x64xf32, #tpu.memory_space<vmem>>, %arg5: memref<1x64xf32, #tpu.memory_space<vmem>>, %arg6: memref<2x32xf32, #tpu.memory_space<vmem>>, %arg7: memref<1x16x32xf32, #tpu.memory_space<vmem>>) attributes {dimension_semantics = [#tpu.dimension_semantics<parallel>], iteration_bounds = array<i64: 2>, scalar_prefetch = 0 : i64, scratch_operands = 0 : i64, tpu.core_type = #tpu.core_type<tc>, window_params = [{transform_indices = @transform_0, window_bounds = array<i64: 1, 16, 32>}, {pipeline_mode = #tpu.pipeline_mode<synchronous>, transform_indices = @transform_1, window_bounds = array<i64: 32, 128>}, {pipeline_mode = #tpu.pipeline_mode<synchronous>, transform_indices = @transform_2, window_bounds = array<i64: 16, 128>}, {pipeline_mode = #tpu.pipeline_mode<synchronous>, transform_indices = @transform_3, window_bounds = array<i64: 128, 64>}, {pipeline_mode = #tpu.pipeline_mode<synchronous>, transform_indices = @transform_4, window_bounds = array<i64: 1, 64>}, {pipeline_mode = #tpu.pipeline_mode<synchronous>, transform_indices = @transform_5, window_bounds = array<i64: 2, 32>}, {transform_indices = @transform_6, window_bounds = array<i64: 1, 16, 32>}]} {
    %c0 = arith.constant 0 : index
    %c0_0 = arith.constant 0 : index
    %c0_1 = arith.constant 0 : index
    %0 = vector.load %arg1[%c0, %c0_0, %c0_1] : memref<1x16x32xf32, #tpu.memory_space<vmem>>, vector<1x16x32xf32>
    %1 = vector.shape_cast %0 : vector<1x16x32xf32> to vector<16x32xf32>
    %c0_2 = arith.constant 0 : index
    %c0_3 = arith.constant 0 : index
    %2 = vector.load %arg2[%c0_2, %c0_3] : memref<32x128xf32, #tpu.memory_space<vmem>>, vector<32x128xf32>
    %cst = arith.constant dense<0.000000e+00> : vector<16x128xf32>
    %3 = tpu.matmul %1, %2, %cst {dimension_numbers = #tpu.dot_dimension_numbers<[1], [0], [0], [1], [0, 0, 1, 1], [], []>} : vector<16x32xf32>, vector<32x128xf32>, vector<16x128xf32> -> vector<16x128xf32>
    %c0_4 = arith.constant 0 : index
    %c0_5 = arith.constant 0 : index
    %4 = vector.load %arg3[%c0_4, %c0_5] : memref<16x128xf32, #tpu.memory_space<vmem>>, vector<16x128xf32>
    %5 = arith.mulf %4, %3 : vector<16x128xf32>
    %cst_6 = arith.constant dense<0.000000e+00> : vector<128xf32>
    %6 = vector.multi_reduction <add>, %5, %cst_6 [0] : vector<16x128xf32> to vector<128xf32>
    %7 = vector.shape_cast %6 : vector<128xf32> to vector<1x128xf32>
    %c0_7 = arith.constant 0 : index
    %c0_8 = arith.constant 0 : index
    %8 = vector.load %arg4[%c0_7, %c0_8] : memref<128x64xf32, #tpu.memory_space<vmem>>, vector<128x64xf32>
    %cst_9 = arith.constant dense<0.000000e+00> : vector<1x64xf32>
    %9 = tpu.matmul %7, %8, %cst_9 {dimension_numbers = #tpu.dot_dimension_numbers<[1], [0], [0], [1], [0, 0, 1, 1], [], []>} : vector<1x128xf32>, vector<128x64xf32>, vector<1x64xf32> -> vector<1x64xf32>
    %c0_10 = arith.constant 0 : index
    %c0_11 = arith.constant 0 : index
    %10 = vector.load %arg5[%c0_10, %c0_11] : memref<1x64xf32, #tpu.memory_space<vmem>>, vector<1x64xf32>
    %11 = arith.addf %9, %10 : vector<1x64xf32>
    %12 = vector.extract_strided_slice %11 {offsets = [0, 0], sizes = [1, 32], strides = [1, 1]} : vector<1x64xf32> to vector<1x32xf32>
    %13 = vector.shape_cast %12 : vector<1x32xf32> to vector<1x32xf32>
    %14 = vector.broadcast %13 : vector<1x32xf32> to vector<16x32xf32>
    %15 = vector.extract_strided_slice %11 {offsets = [0, 32], sizes = [1, 32], strides = [1, 1]} : vector<1x64xf32> to vector<1x32xf32>
    %16 = vector.shape_cast %15 : vector<1x32xf32> to vector<1x32xf32>
    %17 = vector.broadcast %16 : vector<1x32xf32> to vector<16x32xf32>
    %18 = tpu.iota {dimensions = array<i32: 0>} : vector<16x32xi32>
    %c8_i32 = arith.constant 8 : i32
    %19 = vector.broadcast %c8_i32 : i32 to vector<16x32xi32>
    %20 = arith.cmpi slt, %18, %19 : vector<16x32xi32>
    %21 = arith.select %20, %14, %17 : vector<16x32xi1>, vector<16x32xf32>
    %22 = arith.addf %1, %21 : vector<16x32xf32>
    %cst_12 = arith.constant dense<0.000000e+00> : vector<16xf32>
    %23 = vector.multi_reduction <add>, %22, %cst_12 [1] : vector<16x32xf32> to vector<16xf32>
    %24 = vector.shape_cast %23 : vector<16xf32> to vector<16x1xf32>
    %cst_13 = arith.constant 3.200000e+01 : f32
    %25 = vector.broadcast %cst_13 : f32 to vector<16x1xf32>
    %26 = arith.divf %24, %25 : vector<16x1xf32>
    %27 = vector.broadcast %26 : vector<16x1xf32> to vector<16x32xf32>
    %28 = arith.subf %22, %27 : vector<16x32xf32>
    %29 = arith.mulf %28, %28 : vector<16x32xf32>
    %cst_14 = arith.constant dense<0.000000e+00> : vector<16xf32>
    %30 = vector.multi_reduction <add>, %29, %cst_14 [1] : vector<16x32xf32> to vector<16xf32>
    %31 = vector.shape_cast %30 : vector<16xf32> to vector<16x1xf32>
    %cst_15 = arith.constant 3.100000e+01 : f32
    %32 = vector.broadcast %cst_15 : f32 to vector<16x1xf32>
    %33 = arith.divf %31, %32 : vector<16x1xf32>
    %34 = math.sqrt %33 : vector<16x1xf32>
    %cst_16 = arith.constant 9.99999997E-7 : f32
    %35 = vector.broadcast %cst_16 : f32 to vector<16x1xf32>
    %36 = arith.addf %34, %35 : vector<16x1xf32>
    %37 = tpu.reciprocal %36 {approx = true} : vector<16x1xf32> -> vector<16x1xf32>
    %c0_17 = arith.constant 0 : index
    %c0_18 = arith.constant 0 : index
    %38 = vector.load %arg6[%c0_17, %c0_18] : memref<2x32xf32, #tpu.memory_space<vmem>>, vector<1x32xf32>
    %c1 = arith.constant 1 : index
    %c0_19 = arith.constant 0 : index
    %39 = vector.load %arg6[%c1, %c0_19] : memref<2x32xf32, #tpu.memory_space<vmem>>, vector<1x32xf32>
    %40 = vector.broadcast %26 : vector<16x1xf32> to vector<16x32xf32>
    %41 = arith.subf %22, %40 : vector<16x32xf32>
    %42 = vector.broadcast %37 : vector<16x1xf32> to vector<16x32xf32>
    %43 = arith.mulf %41, %42 : vector<16x32xf32>
    %44 = vector.broadcast %38 : vector<1x32xf32> to vector<16x32xf32>
    %45 = arith.mulf %43, %44 : vector<16x32xf32>
    %46 = vector.broadcast %39 : vector<1x32xf32> to vector<16x32xf32>
    %47 = arith.addf %45, %46 : vector<16x32xf32>
    %c0_20 = arith.constant 0 : index
    %c0_21 = arith.constant 0 : index
    %c0_22 = arith.constant 0 : index
    %48 = vector.load %arg7[%c0_20, %c0_21, %c0_22] : memref<1x16x32xf32, #tpu.memory_space<vmem>>, vector<1x16x32xf32>
    %49 = vector.shape_cast %48 : vector<1x16x32xf32> to vector<16x32xf32>
    %50 = vector.shape_cast %47 : vector<16x32xf32> to vector<1x16x32xf32>
    tpu.vector_store %arg7[%c0_20, %c0_21, %c0_22], %50 {strides = array<i32>} : memref<1x16x32xf32, #tpu.memory_space<vmem>>, vector<1x16x32xf32>,
    return
  }
  func.func @transform_0(%arg0: i32) -> (i32, i32, i32) {
    %c0_i32 = arith.constant 0 : i32
    %c0_i32_0 = arith.constant 0 : i32
    %c0_i32_1 = arith.constant 0 : i32
    return %arg0, %c0_i32, %c0_i32_0 : i32, i32, i32
  }
  func.func @transform_1(%arg0: i32) -> (i32, i32) {
    %c0_i32 = arith.constant 0 : i32
    %c0_i32_0 = arith.constant 0 : i32
    %c0_i32_1 = arith.constant 0 : i32
    return %c0_i32, %c0_i32_0 : i32, i32
  }
  func.func @transform_2(%arg0: i32) -> (i32, i32) {
    %c0_i32 = arith.constant 0 : i32
    %c0_i32_0 = arith.constant 0 : i32
    %c0_i32_1 = arith.constant 0 : i32
    return %c0_i32, %c0_i32_0 : i32, i32
  }
  func.func @transform_3(%arg0: i32) -> (i32, i32) {
    %c0_i32 = arith.constant 0 : i32
    %c0_i32_0 = arith.constant 0 : i32
    %c0_i32_1 = arith.constant 0 : i32
    return %c0_i32, %c0_i32_0 : i32, i32
  }
  func.func @transform_4(%arg0: i32) -> (i32, i32) {
    %c0_i32 = arith.constant 0 : i32
    %c0_i32_0 = arith.constant 0 : i32
    %c0_i32_1 = arith.constant 0 : i32
    return %c0_i32, %c0_i32_0 : i32, i32
  }
  func.func @transform_5(%arg0: i32) -> (i32, i32) {
    %c0_i32 = arith.constant 0 : i32
    %c0_i32_0 = arith.constant 0 : i32
    %c0_i32_1 = arith.constant 0 : i32
    return %c0_i32, %c0_i32_0 : i32, i32
  }
  func.func @transform_6(%arg0: i32) -> (i32, i32, i32) {
    %c0_i32 = arith.constant 0 : i32
    %c0_i32_0 = arith.constant 0 : i32
    %c0_i32_1 = arith.constant 0 : i32
    return %arg0, %c0_i32, %c0_i32_0 : i32, i32, i32
  }
}

</mosaic_0001>

<bundles_post_ra>
// kernel: co_selection.1
= control target key start
LH: loop header
LB: loop body
LE: loop exit
PB: predicated region body
PF: predicated region fallthrough
CT: control target
= control target key end

     0   :  { %s753_s21 = smov 0   ;;  %s860_s0 = inlined_call_operand.vmem [shape: f32[2,16,32], index: 0, kind: input, shape index: {}]   ;;  %s861_s1 = inlined_call_operand.vmem [shape: f32[32,128], index: 1, kind: input, shape index: {}]   ;;  %s862_s2 = inlined_call_operand.vmem [shape: f32[16,128], index: 2, kind: input, shape index: {}]   ;;  %s863_s3 = inlined_call_operand.vmem [shape: f32[128,64], index: 3, kind: input, shape index: {}]   ;;  %s864_s4 = inlined_call_operand.vmem [shape: f32[1,64], index: 4, kind: input, shape index: {}]   ;;  %s865_s5 = inlined_call_operand.vmem [shape: f32[2,32], index: 5, kind: input, shape index: {}]   ;;  %s866_s6 = inlined_call_operand.vmem [shape: f32[2,16,32], index: 6, kind: output, shape index: {}]  }
   0x1 LB: > { %s568_s22 = sadd.s32 4294967295, %s712_s21   ;;  %p572_p0 = scmp.ge.s32.totalorder %s712_s21, 1  ;;  %s712_s21 = sphi %s753_s21, %s16_s21  }
   0x2   : > { %p212_p1 = scmp.lt.s32.totalorder %s712_s21, 3 }
   0x4   : > { %p213_p2 = pnand %p572_p0, %p212_p1 }
   0x5   : > { %v254_v0 = vld [vmem:[%s861_s1] sm:$0xff] (!%p213_p2)  ;;  %v255_v1 = vld [vmem:[%s861_s1 + $0x8] sm:$0xff] (!%p213_p2)  ;;  %v256_v2 = vld [vmem:[%s861_s1 + $0x10] sm:$0xff] (!%p213_p2)  ;;  %p242_p3 = scmp.lt.s32.totalorder (!%p213_p2), %s568_s22, 1  ;;  %v714_v5 = vmov (!%p213_p2), 0.0|0.0   ;;  %vm258_vm0 = vcmask (!%p213_p2), 261120   ;;  %v438_v47 = vlaneseq (!%p213_p2) }
   0x6   : > { %216 = sbr.rel (%p213_p2) target bundleno = 909 (0x38d), region = 44  ;;  %v654_v3 = vpack.c.bf16 (!%p213_p2), %v255_v1, %v254_v0  ;;  %v257_v4 = vld [vmem:[%s861_s1 + $0x18] sm:$0xff] (!%p213_p2)  ;;  %662 = vmatprep.subr.bf16.mxu1 (!%p213_p2), %v714_v5  ;;  %v351_v6 = vld [vmem:[%s863_s3] sm:$0xff] (!%p213_p2)  ;;  %v352_v7 = vld [vmem:[%s863_s3 + $0x8] sm:$0xff] (!%p213_p2)  ;;  %vm715_vm1 = vmmov (!%p213_p2), 0   ;;  %v716_v33 = vmov (!%p213_p2), 0.0  }
   0x7   : > { %v658_v8 = vpack.c.bf16 (!%p213_p2), %v257_v4, %v256_v2  ;;  %v663_v9 = vpack.c.bf16 (!%p213_p2), %v352_v7, %v351_v6  ;;  %v353_v10 = vld [vmem:[%s863_s3 + $0x10] sm:$0xff] (!%p213_p2)  ;;  %v354_v11 = vld [vmem:[%s863_s3 + $0x18] sm:$0xff] (!%p213_p2)  ;;  %v355_v13 = vld [vmem:[%s863_s3 + $0x20] sm:$0xff] (!%p213_p2)  ;;  %651 = vmatprep.mubr.msk.f32.mxu1 (!%p213_p2), %vm715_vm1, %v716_v33  ;;  %v439_v48 = vshrl.u32 (!%p213_p2), %v438_v47, 7  ;;  %s717_s30 = smov (!%p213_p2), 96  }
   0x8   : > { %655 = vmatprep.subr.bf16.mxu0 (!%p213_p2), %v654_v3  ;;  %v666_v12 = vpack.c.bf16 (!%p213_p2), %v354_v11, %v353_v10  ;;  %v356_v14 = vld [vmem:[%s863_s3 + $0x28] sm:$0xff] (!%p213_p2)  ;;  %v357_v18 = vld [vmem:[%s863_s3 + $0x30] sm:$0xff] (!%p213_p2)  ;;  %v358_v19 = vld [vmem:[%s863_s3 + $0x38] sm:$0xff] (!%p213_p2) }
   0x9   : > { %657 = vmatpush3.bf16.msra.mxu0 (!%p213_p2), %v654_v3  ;;  %664 = vmatpush3.bf16.msra.mxu1 (!%p213_p2), %v663_v9  ;;  %v669_v17 = vpack.c.bf16 (!%p213_p2), %v356_v14, %v355_v13  ;;  %v672_v20 = vpack.c.bf16 (!%p213_p2), %v358_v19, %v357_v18  ;;  %v359_v21 = vld [vmem:[%s863_s3 + $0x40] sm:$0xff] (!%p213_p2)  ;;  %v360_v22 = vld [vmem:[%s863_s3 + $0x48] sm:$0xff] (!%p213_p2)  ;;  %v361_v24 = vld [vmem:[%s863_s3 + $0x50] sm:$0xff] (!%p213_p2)  ;;  %v440_v50 = vsub.s32 (!%p213_p2), 0, %v439_v48 }
   0xa   : > { %659 = vmatprep.subr.bf16.mxu0 (!%p213_p2), %v658_v8  ;;  %665 = vmatprep.subr.bf16.mxu1 (!%p213_p2), %v714_v5  ;;  %v675_v23 = vpack.c.bf16 (!%p213_p2), %v360_v22, %v359_v21  ;;  %v362_v25 = vld [vmem:[%s863_s3 + $0x58] sm:$0xff] (!%p213_p2)  ;;  %v363_v27 = vld [vmem:[%s863_s3 + $0x60] sm:$0xff] (!%p213_p2)  ;;  %v364_v28 = vld [vmem:[%s863_s3 + $0x68] sm:$0xff] (!%p213_p2) }
   0xb   : > { %v678_v26 = vpack.c.bf16 (!%p213_p2), %v362_v25, %v361_v24  ;;  %v681_v29 = vpack.c.bf16 (!%p213_p2), %v364_v28, %v363_v27  ;;  %v365_v30 = vld [vmem:[%s863_s3 + $0x70] sm:$0xff] (!%p213_p2)  ;;  %v366_v31 = vld [vmem:[%s863_s3 + $0x78] sm:$0xff] (!%p213_p2)  ;;  %v341_v34 = vld [vmem:[%s862_s2 + $0x8] sm:$0xff] (!%p213_p2) }
   0xc   : > { %v684_v32 = vpack.c.bf16 (!%p213_p2), %v366_v31, %v365_v30  ;;  %v340_v35 = vld [vmem:[%s862_s2] sm:$0xff] (!%p213_p2) }
   0xd   : > { %s868_s22 = smov (!%p242_p3, %s568_s22), 1  ;;  %661 = vmatpush3.bf16.msra.mxu0 %v658_v8  ;;  %667 = vmatpush3.bf16.msra.mxu1 %v666_v12  ;;  %v367_v49 = vld [vmem:[%s864_s4] sm:$0x1] }
   0xe   : > { %s583_s15 = sshll.u32 %s868_s22, 4  ;;  %668 = vmatprep.subr.bf16.mxu1 %v714_v5 }
   0xf   : > { %s246_s18 = scalar_lea.vmem %s860_s0, %s583_s15  ;;  %s251_s13 = scalar_lea.vmem %s866_s6, %s583_s15 }
  0x10   : > { %v252_v15 = vld [vmem:[%s246_s18] sm:$0xff]  ;;  %v253_v16 = vld [vmem:[%s246_s18 + $0x8] sm:$0xff] }
  0x11   : > { %616 = vmatprep.mubr.msk.f32.mxu0 %vm258_vm0, %v252_v15  ;;  %670 = vmatpush3.bf16.msra.mxu1 %v669_v17  ;;  %v580_v17 = vld [vmem:[%s865_s5 + $0x1] ss:$0 sm:$0xff] }
  0x12   : > { %617 = vmatmul.mubr.msk.f32.vlgmr.msra.gmra.mrb[0].mxu0 %vm258_vm0, %v253_v16  ;;  %671 = vmatprep.subr.bf16.mxu1 %v714_v5 }
  0x15   : > { %673 = vmatpush3.bf16.msra.mxu1 %v672_v20 }
  0x16   : > { %674 = vmatprep.subr.bf16.mxu1 %v714_v5 }
  0x19   : > { %676 = vmatpush3.bf16.msra.mxu1 %v675_v23 }
  0x1a   : > { %677 = vmatprep.subr.bf16.mxu1 %v714_v5 }
  0x1d   : > { %679 = vmatpush3.bf16.msra.mxu1 %v678_v26 }
  0x1e   : > { %680 = vmatprep.subr.bf16.mxu1 %v714_v5 }
  0x21   : > { %682 = vmatpush3.bf16.msra.mxu1 %v681_v29 }
  0x22   : > { %683 = vmatprep.subr.bf16.mxu1 %v714_v5 }
  0x25   : > { %685 = vmatpush3.bf16.msra.mxu1 %v684_v32 }
  0xe5   : > { %v618_v36 = vpop.f32.mrb[0].mxu0 }
  0xe6   : > { %v343_v37 = vmul.f32 %v618_v36, %v341_v34  ;;  %v331_v38 = vpop.f32.mrb[1].mxu0 }
  0xe7   : > { %v342_v39 = vmul.f32 %v340_v35, %v331_v38 }
  0xe9   : > { %v344_v40 = vadd.f32 %v343_v37, %v342_v39 }
  0xeb   : > { %v345_v41 = vrot.slane %v344_v40, 4 }
  0xed   : > { %v346_v42 = vadd.f32 %v345_v41, %v344_v40 }
  0xef   : > { %v347_v43 = vrot.slane %v346_v42, 2 }
  0xf1   : > { %v348_v44 = vadd.f32 %v347_v43, %v346_v42 }
  0xf3   : > { %v349_v45 = vrot.slane %v348_v44, 1 }
  0xf5   : > { %v350_v46 = vadd.f32 %v349_v45, %v348_v44 }
  0xf7   : > { %652 = vmatmul.mubr.f32.vlgmr.msra.gmra.mrb[0].mxu1 %v350_v46 }
 0x1ca   : > { %v434_v51 = vpop.f32.mrb[0].mxu1 }
 0x1cb   : > { %v435_v52 = vadd.f32 %v434_v51, %v367_v49  ;;  %v653_v53 = vpop.f32.mrb[1].mxu1 }
 0x1cd   : > { %v441_v54 = vrot.slane %v435_v52, %v440_v50 }
 0x1cf   : > { %448 = vrot.lane.b32.xlu0 %v441_v54, %s717_s30  ;;  %v453_v55 = vadd.f32 %v441_v54, %v252_v15  ;;  %v579_v15 = vld [vmem:[%s865_s5] ss:$0 sm:$0xff] }
 0x1d1   : > { %v455_v56 = vsel %vm258_vm0, %v453_v55, 0.0 }
 0x1ee   : > { %456 = vadd.xlane.f32.xlu0 %v455_v56 }
 0x241   : > { %v449_v57 = vpop.permute.xlu0 %448 }
 0x242   : > { %v454_v58 = vadd.f32 %v449_v57, %v253_v16 }
 0x244   : > { %v458_v59 = vsel %vm258_vm0, %v454_v58, 0.0 }
 0x245   : > { %459 = vadd.xlane.f32.xlu1 %v458_v59 }
 0x27b   : > { %v457_v60 = vpop.xlane.xlu0 %456 }
 0x27c   : > { %v462_v61 = vmul.f32 0.03125, %v457_v60 }
 0x27e   : > { %v464_v62 = vsub.f32 %v453_v55, %v462_v61 }
 0x280   : > { %v466_v63 = vmul.f32 %v464_v62, %v464_v62 }
 0x282   : > { %v468_v0 = vsel %vm258_vm0, %v466_v63, 0.0 }
 0x283   : > { %469 = vadd.xlane.f32.xlu1 %v468_v0 }
 0x2d2   : > { %v460_v1 = vpop.xlane.xlu1 %459 }
 0x2d3   : > { %v463_v2 = vmul.f32 0.03125, %v460_v1 }
 0x2d5   : > { %v465_v3 = vsub.f32 %v454_v58, %v463_v2 }
 0x2d7   : > { %v467_v4 = vmul.f32 %v465_v3, %v465_v3 }
 0x2d9   : > { %v471_v5 = vsel %vm258_vm0, %v467_v4, 0.0 }
 0x2da   : > { %472 = vadd.xlane.f32.xlu1 %v471_v5 }
 0x310   : > { %v470_v6 = vpop.xlane.xlu1 %469 }
 0x311   : > { %v475_v7 = vmul.f32 0.032258064, %v470_v6 }
 0x313   : > { %698 = vrsqrt.f32 %v475_v7  ;;  %vm479_vm2 = vcmp.eq.f32.partialorder %v475_v7, inf  ;;  %v482_v10 = vand.u32 2147483648, %v475_v7  ;;  %vm481_vm3 = vcmp.eq.f32.partialorder %v475_v7, 0.0 }
 0x31d   : > { %v699_v8 = vpop.eup %698 }
 0x31e   : > { %v478_v9 = vmul.f32 %v699_v8, %v475_v7 }
 0x320   : > { %v480_v11 = vsel %vm479_vm2, %v475_v7, %v478_v9 }
 0x321   : > { %v483_v12 = vsel %vm481_vm3, %v482_v10, %v480_v11 }
 0x322   : > { %v491_v13 = vadd.f32 1e-06, %v483_v12 }
 0x324   : > { %700 = vrcp.f32 %v491_v13 }
 0x32e   : > { %v701_v14 = vpop.eup %700 }
 0x32f   : > { %v497_v16 = vmul.f32 %v701_v14, %v464_v62 }
 0x331   : > { %v503_v18 = vmul.f32 %v579_v15, %v497_v16 }
 0x333   : > { %v509_v19 = vadd.f32 %v580_v17, %v503_v18 }
 0x335   : > { %511 = vst.msk [vmem:[%s251_s13] sm:$0xff] %vm258_vm0, %v509_v19 }
 0x367   : > { %v473_v20 = vpop.xlane.xlu1 %472 }
 0x368   : > { %v476_v21 = vmul.f32 0.032258064, %v473_v20 }
 0x36a   : > { %702 = vrsqrt.f32 %v476_v21  ;;  %vm486_vm4 = vcmp.eq.f32.partialorder %v476_v21, inf  ;;  %v489_v24 = vand.u32 2147483648, %v476_v21  ;;  %vm488_vm5 = vcmp.eq.f32.partialorder %v476_v21, 0.0 }
 0x374   : > { %v703_v22 = vpop.eup %702 }
 0x375   : > { %v485_v23 = vmul.f32 %v703_v22, %v476_v21 }
 0x377   : > { %v487_v25 = vsel %vm486_vm4, %v476_v21, %v485_v23 }
 0x378   : > { %v490_v26 = vsel %vm488_vm5, %v489_v24, %v487_v25 }
 0x379   : > { %v492_v27 = vadd.f32 1e-06, %v490_v26 }
 0x37b   : > { %704 = vrcp.f32 %v492_v27 }
 0x385   : > { %v705_v28 = vpop.eup %704 }
 0x386   : > { %v498_v29 = vmul.f32 %v705_v28, %v465_v3 }
 0x388   : > { %v504_v30 = vmul.f32 %v579_v15, %v498_v29 }
 0x38a   : > { %v510_v31 = vadd.f32 %v580_v17, %v504_v30 }
 0x38c   : > { %512 = vst.msk [vmem:[%s251_s13 + $0x8] sm:$0xff] %vm258_vm0, %v510_v31 }
 0x38d PF: > { %s16_s21 = sadd.s32 1, %s712_s21  }
 0x38e   : > { %p13_p4 = scmp.ge.s32.totalorder %s16_s21, 4  }
 0x390   :  { %15 = sbr.rel (!%p13_p4) target bundleno = 1 (0x1), region = 74 }

</bundles_post_ra>
